<compile_context>
chip_gen: v5e
topology: v5e:2x2
jax: 0.10.0
libtpu: 0.0.40
codegen_flags: <defaults>
</compile_context>

<pallas_src>
import functools
import math

import jax
import jax.numpy as jnp
from jax.experimental import pallas as pl
from jax.experimental.pallas import tpu as pltpu


_MIN_DMA_ROW_BYTES = 4096     # rows smaller than this are gathered via jnp.take
_MAX_ROWS_PER_STEP = 32       # cap on rows per grid step (DMA descriptors)


# ---------------------------------------------------------------------------
# Kernel 1: group-weight computation + weighted multinomial (inverse-CDF)
#   inputs : grp_ref (1, B) int32   -- group id per sample (lane-dense)
#            u_ref   (B, 1) float32 -- uniform [0,1) randoms, one per draw
#   output : idx_ref (B, 1) int32   -- sampled indices (with replacement)
# ---------------------------------------------------------------------------
def _sampling_kernel(grp_ref, u_ref, idx_ref, *, num_group, tau, batch_size):
    B = batch_size
    grp = grp_ref[...]                                     # (1, B) int32

    # per-group count -> weight (n_g / B) ** tau, normalized over groups
    gw = []
    for g in range(num_group):
        cnt = jnp.sum((grp == g).astype(jnp.float32))      # scalar
        w_g = jnp.where(
            cnt > 0.0,
            jnp.exp(tau * jnp.log(jnp.maximum(cnt, 1.0) / float(B))),
            0.0,
        )
        gw.append(w_g)
    total = gw[0]
    for w_g in gw[1:]:
        total = total + w_g

    # per-sample weight w[j] = gw[group[j]], then probabilities
    w = jnp.zeros((1, B), jnp.float32)
    for g in range(num_group):
        w = w + jnp.where(grp == g, gw[g] / total, 0.0)
    p = w / jnp.sum(w)                                     # (1, B)

    # inclusive CDF, lane-dense (1, B): Hillis-Steele scan with log2(B)
    # shifted adds -- only (1, B) temporaries (no O(B^2) iota/masked sums).
    cdf = p
    shift = 1
    while shift < B:
        shifted = jnp.concatenate(
            [jnp.zeros((1, shift), jnp.float32), cdf[:, :B - shift]], axis=1)
        cdf = cdf + shifted
        shift *= 2

    # inverse-CDF sampling: idx[d] = #{ j : cdf[j] <= u[d] }
    u = u_ref[...]                                         # (B, 1)
    cmp = (u >= cdf)                                       # (B, B) bool
    if B >= 512:
        # Large B: push the O(B^2) count onto the otherwise-idle MXU as an
        # f32 matmul (exact: sums are small integers representable in f32;
        # works on v7x where the MXU has no int path).
        ones = jnp.ones((B, 1), jnp.float32)
        idx = jnp.dot(cmp.astype(jnp.float32), ones,
                      preferred_element_type=jnp.float32).astype(jnp.int32)
    else:
        idx = jnp.sum(cmp.astype(jnp.int32), axis=1, keepdims=True)
    idx_ref[...] = jnp.minimum(idx, B - 1)


# ---------------------------------------------------------------------------
# Kernel 2: manual-DMA row gather, R rows per grid step, DMA straight into the
# pipelined output blocks.
#   comp_ref : (B,) int32 in SMEM (scalar prefetch) -- composed indices
#   refs     : n HBM inputs (memory_space=pl.ANY), n output blocks
#              (R*sl_k, ln_k), then one DMA semaphore array (n, R)
# ---------------------------------------------------------------------------
def _gather_kernel(comp_ref, *refs, rows_per_step, sublanes):
    n = len(sublanes)
    hbm_refs = refs[:n]
    out_refs = refs[n:2 * n]
    sem = refs[2 * n]

    step = pl.program_id(0)
    base = step * rows_per_step
    srcs = [comp_ref[base + r] for r in range(rows_per_step)]   # SMEM scalars

    copies = []
    # Tensors arrive sorted by descending row size: the large (video) row DMAs
    # are issued first so the small transfers' latency hides under them.
    for k in range(n):
        sl = sublanes[k]
        for r in range(rows_per_step):
            s0 = pl.multiple_of(srcs[r] * sl, sl)
            cp = pltpu.make_async_copy(
                hbm_refs[k].at[pl.ds(s0, sl), :],
                out_refs[k].at[pl.ds(r * sl, sl), :],
                sem.at[k, r],
            )
            cp.start()
            copies.append(cp)
    for cp in copies:                      # all DMAs stay in flight until here
        cp.wait()
    # No vector stores: every byte of each output block was written by DMA.


# ---------------------------------------------------------------------------
# Layout / sizing helpers
# ---------------------------------------------------------------------------
def _row_layout(d):
    """Factor a flattened row of d elements into (sublanes, lanes), preferring
    lane widths that are multiples of 128 (dense vregs / unmasked stores)."""
    for sl in (8, 4, 2, 1):
        if d % sl == 0 and (d // sl) % 128 == 0:
            return sl, d // sl
    for sl in (8, 4, 2, 1):
        if d % sl == 0:
            return sl, d // sl
    return 1, d


def _vmem_capacity_bytes():
    """Physical VMEM bytes for the current chip, with a conservative (v7x)
    fallback if the query is unavailable."""
    try:
        info = pltpu.get_tpu_info()
        for attr in ("vmem_capacity_bytes", "vmem_size_bytes", "vmem_bytes"):
            v = getattr(info, attr, None)
            if v:
                return int(v)
    except Exception:
        pass
    return 64 << 20   # v7x physical VMEM -- safe lower bound across gens


def _pick_rows_per_step(batch_size, row_bytes, sublanes, vmem_budget,
                        max_rows=_MAX_ROWS_PER_STEP):
    """Largest divisor R of B such that the double-buffered output blocks fit
    the VMEM budget and every block's sublane dim is 8-aligned (or full)."""
    total_row = sum(row_bytes)
    best = None
    for r in range(1, batch_size + 1):
        if batch_size % r:
            continue
        if r > max_rows:
            break
        legal = all((r * sl) % 8 == 0 or r == batch_size for sl in sublanes)
        fits = 2 * r * total_row <= vmem_budget
        if legal and fits:
            best = r
    if best is None:
        # Fall back to the smallest legal divisor (vmem_limit is raised below).
        for r in range(1, batch_size + 1):
            if batch_size % r == 0 and all(
                    (r * sl) % 8 == 0 or r == batch_size for sl in sublanes):
                best = r
                break
    return best if best is not None else batch_size


class BaseVideoWeightedOverUnderSamplingPallas:
    """Pallas/TPU port of BaseVideoWeightedOverUnderSampling.forward."""

    def __init__(self, batch_size: int, num_group: int = 2, tau: float = 0.2):
        self._batch_size = batch_size
        self._num_group = num_group
        self._tau = tau
        self._sampling_size = batch_size // num_group   # parity with torch
        self._last_indices = None        # composed indices[shuffle_idx]
        self._last_raw_indices = None    # raw multinomial draws (kernel out)
        self._last_uniforms = None

    # ---- weighted multinomial sampling (Pallas kernel 1) -----------------
    def _sample_indices(self, group, uniforms):
        B = self._batch_size
        grp2d = group.astype(jnp.int32).reshape(1, B)
        u2d = uniforms.astype(jnp.float32).reshape(B, 1)
        idx = pl.pallas_call(
            functools.partial(
                _sampling_kernel,
                num_group=self._num_group,
                tau=self._tau,
                batch_size=B,
            ),
            out_shape=jax.ShapeDtypeStruct((B, 1), jnp.int32),
            grid=(1,),
            in_specs=[
                pl.BlockSpec((1, B), lambda i: (0, 0)),
                pl.BlockSpec((B, 1), lambda i: (0, 0)),
            ],
            out_specs=pl.BlockSpec((B, 1), lambda i: (0, 0)),
        )(grp2d, u2d)
        return idx.reshape(B)

    # ---- fused row gather (Pallas kernel 2) ------------------------------
    def _gather_rows(self, comp, tensors):
        B = self._batch_size
        outputs = [None] * len(tensors)

        kernel_items = []   # (pos, arr, sl, ln, row_bytes)
        for pos, x in enumerate(tensors):
            d = int(math.prod(x.shape[1:])) if x.ndim > 1 else 1
            row_bytes = d * x.dtype.itemsize
            if row_bytes >= _MIN_DMA_ROW_BYTES:
                sl, ln = _row_layout(d)
                kernel_items.append((pos, x, sl, ln, row_bytes))
            else:
                # Tiny rows: per-DMA descriptor cost dominates; XLA gather.
                outputs[pos] = jnp.take(x, comp, axis=0)

        if not kernel_items:
            return outputs

        # Biggest rows first -> their DMAs are issued first in the kernel.
        kernel_items.sort(key=lambda it: -it[4])
        sublanes = tuple(it[2] for it in kernel_items)
        row_bytes = [it[4] for it in kernel_items]

        vmem_cap = _vmem_capacity_bytes()
        R = _pick_rows_per_step(B, row_bytes, sublanes,
                                vmem_budget=vmem_cap // 2)
        footprint = 2 * R * sum(row_bytes)          # double-buffered outputs
        vmem_limit = int(min(int(vmem_cap * 0.9),
                             max(footprint + (8 << 20), 32 << 20)))

        arrs2d = [it[1].reshape(B * it[2], it[3]) for it in kernel_items]
        n = len(arrs2d)

        def out_map(i, comp_ref):                   # comp_ref unused here
            return (i, 0)

        grid_spec = pltpu.PrefetchScalarGridSpec(
            num_scalar_prefetch=1,
            grid=(B // R,),
            in_specs=[pl.BlockSpec(memory_space=pl.ANY)] * n,
            out_specs=[pl.BlockSpec((R * it[2], it[3]), out_map)
                       for it in kernel_items],
            scratch_shapes=[pltpu.SemaphoreType.DMA((n, R))],
        )
        total_bytes = B * sum(row_bytes)
        outs = pl.pallas_call(
            functools.partial(_gather_kernel, rows_per_step=R,
                              sublanes=sublanes),
            out_shape=[jax.ShapeDtypeStruct(a.shape, a.dtype) for a in arrs2d],
            grid_spec=grid_spec,
            compiler_params=pltpu.CompilerParams(
                dimension_semantics=("parallel",),
                vmem_limit_bytes=vmem_limit),
            cost_estimate=pl.CostEstimate(
                flops=0, transcendentals=0,
                bytes_accessed=2 * total_bytes),
        )(comp.astype(jnp.int32), *arrs2d)

        for it, o in zip(kernel_items, outs):
            pos, x = it[0], it[1]
            outputs[pos] = o.reshape(x.shape)
        return outputs

    def __call__(self, key, batch_video, batch_audio, batch_text,
                 batch_target, batch_group):
        B = self._batch_size
        k_mult, k_perm = jax.random.split(key, 2)

        # weighted multinomial sampling (in-kernel inverse-CDF on uniforms)
        uniforms = jax.random.uniform(k_mult, (B,), jnp.float32)
        indices = self._sample_indices(batch_group, uniforms)

        # TODO(synk): torch.randperm / torch RNG streams have no clean
        # in-kernel equivalent; permutation is generated with jax.random.
        shuffle_idx = jax.random.permutation(k_perm, B).astype(jnp.int32)
        comp = jnp.take(indices, shuffle_idx)      # composed gather index

        self._last_uniforms = uniforms
        self._last_raw_indices = indices
        self._last_indices = comp

        video, audio, text, target, group = self._gather_rows(
            comp,
            [batch_video, batch_audio, batch_text, batch_target, batch_group])
        return video, audio, text, target, group


if __name__ == "__main__":
    B, NUM_GROUP, TAU = 8, 2, 0.2
    key = jax.random.PRNGKey(0)
    kv, ka, kt, ky, kg, ks = jax.random.split(key, 6)

    batch_video = jax.random.normal(kv, (B, 4, 3, 16, 16), jnp.float32)
    batch_audio = jax.random.normal(ka, (B, 64, 32), jnp.float32)
    batch_text = jax.random.normal(kt, (B, 8, 32), jnp.float32)
    batch_target = jax.random.randint(ky, (B,), 0, 10, jnp.int32)
    batch_group = jax.random.randint(kg, (B,), 0, NUM_GROUP, jnp.int32)

    module = BaseVideoWeightedOverUnderSamplingPallas(
        batch_size=B, num_group=NUM_GROUP, tau=TAU)
    out = module(ks, batch_video, batch_audio, batch_text,
                 batch_target, batch_group)
    out = jax.block_until_ready(out)
    video, audio, text, target, group = out

    # --- shape checks ---
    assert video.shape == batch_video.shape
    assert audio.shape == batch_audio.shape
    assert text.shape == batch_text.shape
    assert target.shape == batch_target.shape
    assert group.shape == batch_group.shape

    # --- gather kernel vs plain-JAX gather ---
    comp = module._last_indices
    assert bool(jnp.all((comp >= 0) & (comp < B)))
    assert jnp.allclose(video, batch_video[comp])
    assert jnp.allclose(audio, batch_audio[comp])
    assert jnp.allclose(text, batch_text[comp])
    assert jnp.array_equal(target, batch_target[comp])
    assert jnp.array_equal(group, batch_group[comp])

    # --- sampling kernel vs plain-JAX inverse-CDF reference ---
    grp = batch_group.astype(jnp.int32)
    counts = jnp.array([jnp.sum(grp == g) for g in range(NUM_GROUP)],
                       jnp.float32)
    gw = jnp.where(counts > 0, (jnp.maximum(counts, 1.0) / B) ** TAU, 0.0)
    gw = gw / jnp.sum(gw)
    p_ref = gw[grp]
    p_ref = p_ref / jnp.sum(p_ref)
    cdf_ref = jnp.cumsum(p_ref)
    u = module._last_uniforms
    idx_k = module._last_raw_indices
    lo = jnp.where(idx_k > 0, cdf_ref[jnp.maximum(idx_k - 1, 0)], 0.0)
    hi = cdf_ref[idx_k]
    assert bool(jnp.all((idx_k >= 0) & (idx_k < B)))
    assert bool(jnp.all(lo <= u + 1e-5))        # cdf[idx-1] <= u
    assert bool(jnp.all(u <= hi + 1e-5))        # u < cdf[idx] (or clamp at 1)

    print("KERNEL_OK")
</pallas_src>

<mosaic_0001>
module attributes {stable_mosaic.version = 11 : i64} {
  func.func @_sampling_kernel(%arg0: i32, %arg1: memref<1x8xi32, #tpu.memory_space<vmem>>, %arg2: memref<8x1xf32, #tpu.memory_space<vmem>>, %arg3: memref<8x1xi32, #tpu.memory_space<vmem>>) attributes {dimension_semantics = [#tpu.dimension_semantics<arbitrary>], iteration_bounds = array<i64: 1>, scalar_prefetch = 0 : i64, scratch_operands = 0 : i64, tpu.core_type = #tpu.core_type<tc>, window_params = [{pipeline_mode = #tpu.pipeline_mode<synchronous>, transform_indices = @transform_0, window_bounds = array<i64: 1, 8>}, {pipeline_mode = #tpu.pipeline_mode<synchronous>, transform_indices = @transform_1, window_bounds = array<i64: 8, 1>}, {pipeline_mode = #tpu.pipeline_mode<synchronous>, transform_indices = @transform_2, window_bounds = array<i64: 8, 1>}]} {
    %c0 = arith.constant 0 : index
    %c0_0 = arith.constant 0 : index
    %0 = vector.load %arg1[%c0, %c0_0] : memref<1x8xi32, #tpu.memory_space<vmem>>, vector<1x8xi32>
    %c0_i32 = arith.constant 0 : i32
    %1 = vector.broadcast %c0_i32 : i32 to vector<1x8xi32>
    %2 = arith.cmpi eq, %0, %1 : vector<1x8xi32>
    %3 = arith.extui %2 : vector<1x8xi1> to vector<1x8xi32>
    %4 = arith.sitofp %3 : vector<1x8xi32> to vector<1x8xf32>
    %5 = vector.shape_cast %4 : vector<1x8xf32> to vector<1x1x8xf32>
    %cst = arith.constant dense<0.000000e+00> : vector<1xf32>
    %6 = vector.multi_reduction <add>, %5, %cst [1, 2] : vector<1x1x8xf32> to vector<1xf32>
    %7 = vector.shape_cast %6 : vector<1xf32> to vector<1x1x1xf32>
    %8 = vector.extract %7[0, 0, 0] : f32 from vector<1x1x1xf32>
    %cst_1 = arith.constant 0.000000e+00 : f32
    %9 = arith.cmpf ogt, %8, %cst_1 : f32
    %cst_2 = arith.constant 1.000000e+00 : f32
    %10 = arith.maximumf %8, %cst_2 : f32
    %cst_3 = arith.constant 8.000000e+00 : f32
    %11 = arith.divf %10, %cst_3 : f32
    %12 = math.log %11 : f32
    %cst_4 = arith.constant 2.000000e-01 : f32
    %13 = arith.mulf %cst_4, %12 : f32
    %14 = math.exp %13 : f32
    %cst_5 = arith.constant 0.000000e+00 : f32
    %15 = arith.select %9, %14, %cst_5 : f32
    %c1_i32 = arith.constant 1 : i32
    %16 = vector.broadcast %c1_i32 : i32 to vector<1x8xi32>
    %17 = arith.cmpi eq, %0, %16 : vector<1x8xi32>
    %18 = arith.extui %17 : vector<1x8xi1> to vector<1x8xi32>
    %19 = arith.sitofp %18 : vector<1x8xi32> to vector<1x8xf32>
    %20 = vector.shape_cast %19 : vector<1x8xf32> to vector<1x1x8xf32>
    %cst_6 = arith.constant dense<0.000000e+00> : vector<1xf32>
    %21 = vector.multi_reduction <add>, %20, %cst_6 [1, 2] : vector<1x1x8xf32> to vector<1xf32>
    %22 = vector.shape_cast %21 : vector<1xf32> to vector<1x1x1xf32>
    %23 = vector.extract %22[0, 0, 0] : f32 from vector<1x1x1xf32>
    %cst_7 = arith.constant 0.000000e+00 : f32
    %24 = arith.cmpf ogt, %23, %cst_7 : f32
    %cst_8 = arith.constant 1.000000e+00 : f32
    %25 = arith.maximumf %23, %cst_8 : f32
    %cst_9 = arith.constant 8.000000e+00 : f32
    %26 = arith.divf %25, %cst_9 : f32
    %27 = math.log %26 : f32
    %cst_10 = arith.constant 2.000000e-01 : f32
    %28 = arith.mulf %cst_10, %27 : f32
    %29 = math.exp %28 : f32
    %cst_11 = arith.constant 0.000000e+00 : f32
    %30 = arith.select %24, %29, %cst_11 : f32
    %31 = arith.addf %15, %30 : f32
    %cst_12 = arith.constant 0.000000e+00 : f32
    %32 = vector.broadcast %cst_12 : f32 to vector<1x8xf32>
    %c0_i32_13 = arith.constant 0 : i32
    %33 = vector.broadcast %c0_i32_13 : i32 to vector<1x8xi32>
    %34 = arith.cmpi eq, %0, %33 : vector<1x8xi32>
    %35 = arith.divf %15, %31 : f32
    %cst_14 = arith.constant 0.000000e+00 : f32
    %36 = vector.broadcast %35 : f32 to vector<1x8xf32>
    %37 = vector.broadcast %cst_14 : f32 to vector<1x8xf32>
    %38 = arith.select %34, %36, %37 : vector<1x8xi1>, vector<1x8xf32>
    %39 = arith.addf %32, %38 : vector<1x8xf32>
    %c1_i32_15 = arith.constant 1 : i32
    %40 = vector.broadcast %c1_i32_15 : i32 to vector<1x8xi32>
    %41 = arith.cmpi eq, %0, %40 : vector<1x8xi32>
    %42 = arith.divf %30, %31 : f32
    %cst_16 = arith.constant 0.000000e+00 : f32
    %43 = vector.broadcast %42 : f32 to vector<1x8xf32>
    %44 = vector.broadcast %cst_16 : f32 to vector<1x8xf32>
    %45 = arith.select %41, %43, %44 : vector<1x8xi1>, vector<1x8xf32>
    %46 = arith.addf %39, %45 : vector<1x8xf32>
    %47 = vector.shape_cast %46 : vector<1x8xf32> to vector<1x1x8xf32>
    %cst_17 = arith.constant dense<0.000000e+00> : vector<1xf32>
    %48 = vector.multi_reduction <add>, %47, %cst_17 [1, 2] : vector<1x1x8xf32> to vector<1xf32>
    %49 = vector.shape_cast %48 : vector<1xf32> to vector<1x1x1xf32>
    %50 = vector.extract %49[0, 0, 0] : f32 from vector<1x1x1xf32>
    %51 = vector.broadcast %50 : f32 to vector<1x8xf32>
    %52 = arith.divf %46, %51 : vector<1x8xf32>
    %cst_18 = arith.constant 0.000000e+00 : f32
    %53 = vector.broadcast %cst_18 : f32 to vector<1x1xf32>
    %54 = vector.extract_strided_slice %52 {offsets = [0, 0], sizes = [1, 7], strides = [1, 1]} : vector<1x8xf32> to vector<1x7xf32>
    %55 = tpu.concatenate %53, %54 in 1 : vector<1x1xf32>, vector<1x7xf32> -> vector<1x8xf32>
    %56 = arith.addf %52, %55 : vector<1x8xf32>
    %cst_19 = arith.constant 0.000000e+00 : f32
    %57 = vector.broadcast %cst_19 : f32 to vector<1x2xf32>
    %58 = vector.extract_strided_slice %56 {offsets = [0, 0], sizes = [1, 6], strides = [1, 1]} : vector<1x8xf32> to vector<1x6xf32>
    %59 = tpu.concatenate %57, %58 in 1 : vector<1x2xf32>, vector<1x6xf32> -> vector<1x8xf32>
    %60 = arith.addf %56, %59 : vector<1x8xf32>
    %cst_20 = arith.constant 0.000000e+00 : f32
    %61 = vector.broadcast %cst_20 : f32 to vector<1x4xf32>
    %62 = vector.extract_strided_slice %60 {offsets = [0, 0], sizes = [1, 4], strides = [1, 1]} : vector<1x8xf32> to vector<1x4xf32>
    %63 = tpu.concatenate %61, %62 in 1 : vector<1x4xf32>, vector<1x4xf32> -> vector<1x8xf32>
    %64 = arith.addf %60, %63 : vector<1x8xf32>
    %c0_21 = arith.constant 0 : index
    %c0_22 = arith.constant 0 : index
    %65 = vector.load %arg2[%c0_21, %c0_22] : memref<8x1xf32, #tpu.memory_space<vmem>>, vector<8x1xf32>
    %66 = vector.broadcast %65 : vector<8x1xf32> to vector<8x8xf32>
    %67 = vector.broadcast %64 : vector<1x8xf32> to vector<8x8xf32>
    %68 = arith.cmpf oge, %66, %67 : vector<8x8xf32>
    %69 = arith.extui %68 : vector<8x8xi1> to vector<8x8xi32>
    %cst_23 = arith.constant dense<0> : vector<8xi32>
    %70 = vector.multi_reduction <add>, %69, %cst_23 [1] : vector<8x8xi32> to vector<8xi32>
    %71 = vector.shape_cast %70 : vector<8xi32> to vector<8x1xi32>
    %c7_i32 = arith.constant 7 : i32
    %72 = vector.broadcast %c7_i32 : i32 to vector<8x1xi32>
    %73 = arith.minsi %71, %72 : vector<8x1xi32>
    %c0_24 = arith.constant 0 : index
    %c0_25 = arith.constant 0 : index
    %74 = vector.load %arg3[%c0_24, %c0_25] : memref<8x1xi32, #tpu.memory_space<vmem>>, vector<8x1xi32>
    tpu.vector_store %arg3[%c0_24, %c0_25], %73 {strides = array<i32>} : memref<8x1xi32, #tpu.memory_space<vmem>>, vector<8x1xi32>,
    return
  }
  func.func @transform_0(%arg0: i32) -> (i32, i32) {
    %c0_i32 = arith.constant 0 : i32
    %c0_i32_0 = arith.constant 0 : i32
    %c0_i32_1 = arith.constant 0 : i32
    return %c0_i32, %c0_i32_0 : i32, i32
  }
  func.func @transform_1(%arg0: i32) -> (i32, i32) {
    %c0_i32 = arith.constant 0 : i32
    %c0_i32_0 = arith.constant 0 : i32
    %c0_i32_1 = arith.constant 0 : i32
    return %c0_i32, %c0_i32_0 : i32, i32
  }
  func.func @transform_2(%arg0: i32) -> (i32, i32) {
    %c0_i32 = arith.constant 0 : i32
    %c0_i32_0 = arith.constant 0 : i32
    %c0_i32_1 = arith.constant 0 : i32
    return %c0_i32, %c0_i32_0 : i32, i32
  }
}

</mosaic_0001>

<bundles_post_ra>
// kernel: tpu_custom_call.1
= control target key start
LH: loop header
LB: loop body
LE: loop exit
PB: predicated region body
PF: predicated region fallthrough
CT: control target
= control target key end

     0   :  { %vm15_vm0 = vcmask 57344   ;;  %v246_v1 = vmov 0.0   ;;  %v247_v6 = vmov 8.0   ;;  %s248_s11 = smov 1.0   ;;  %s249_s29 = smov 1   ;;  %vm153_vm12 = vcmask 7168   ;;  %s298_s0 = inlined_call_operand.vmem [shape: s32[1,8], index: 0, kind: input, shape index: {}]   ;;  %s299_s1 = inlined_call_operand.vmem [shape: f32[8,1], index: 1, kind: input, shape index: {}]   ;;  %s300_s2 = inlined_call_operand.vmem [shape: s32[8,1], index: 2, kind: output, shape index: {}]  }
   0x1   :  { %v271_v0 = vld [vmem:[%s298_s0] sm:$0x1]  ;;  %232 = vrcp.f32 %v247_v6  ;;  %s251_s4 = smov 2   ;;  %vm161_vm13 = vcmask 15360   ;;  %s252_s5 = smov 4   ;;  %vm169_vm14 = vcmask 31744  }
   0x2   :  { %vm12_vm1 = vcmp.eq.s32.totalorder %v271_v0, 0  ;;  %vm47_vm2 = vcmp.eq.s32.totalorder %v271_v0, 1  ;;  %vm183_vm15 = vcmask 64512  }
   0x3   :  { %v204_v2 = vsel %vm12_vm1, 1.0, %v246_v1  ;;  %v205_v4 = vsel %vm47_vm2, 1.0, %v246_v1 }
   0x4   :  { %v16_v3 = vsel %vm15_vm0, %v204_v2, 0.0  ;;  %v50_v5 = vsel %vm15_vm0, %v205_v4, 0.0 }
   0x5   :  { %17 = vadd.xlane.f32.xlu0 %v16_v3 }
   0x7   :  { %v233_v7 = vpop.eup %232 }
   0x8   :  { %v29_v8 = vmul.f32 8.0, %v233_v7  ;;  %vm33_vm3 = vweird.f32 %v233_v7 }
   0xa   :  { %v30_v9 = vsub.f32 1.0, %v29_v8 }
   0xc   :  { %v31_v13 = vmul.f32 %v233_v7, %v30_v9 }
   0xd   :  { %51 = vadd.xlane.f32.xlu0 %v50_v5 }
   0xe   :  { %v32_v16 = vadd.f32 %v233_v7, %v31_v13  ;;  %v250_v13 = vmov 0  }
   0xf   :  { %231 = vset.pattern.permute.xlu0 %v250_v13 }
  0x10   :  { %v34_v19 = vsel %vm33_vm3, %v233_v7, %v32_v16 }
  0x78   :  { %v18_v10 = vpop.xlane.xlu0 %17 }
  0x79   :  { %v19_v11 = vrot.slane %v18_v10, 4 }
  0x7b   :  { %v20_v12 = vadd.f32 %v19_v11, %v18_v10 }
  0x7d   :  { %v21_v14 = vrot.slane %v20_v12, 2 }
  0x7f   :  { %v22_v15 = vadd.f32 %v21_v14, %v20_v12  ;;  %v172_v12 = vld [vmem:[%s299_s1] sm:$0xff] }
  0x80   :  { %v52_v23 = vpop.xlane.xlu0 %51  ;;  %175 = vperm.xlu0 %231, %v172_v12  }
  0x81   :  { %v23_v17 = vrot.slane %v22_v15, 1  ;;  %v53_v24 = vrot.slane %v52_v23, 4 }
  0x83   :  { %v24_v18 = vadd.f32 %v23_v17, %v22_v15  ;;  %v54_v25 = vadd.f32 %v53_v24, %v52_v23 }
  0x85   :  { %206 = vpush %v24_v18  ;;  %v55_v26 = vrot.slane %v54_v25, 2 }
  0x86   :  { %208 = vpush %v34_v19 }
  0x87   :  { %v56_v29 = vadd.f32 %v55_v26, %v54_v25 }
  0x89   :  { %v57_v30 = vrot.slane %v56_v29, 1 }
  0x8b   :  { %v58_v32 = vadd.f32 %v57_v30, %v56_v29 }
  0xb6   :  { %s207_s0 = spop %206 }
  0xb7   :  { %s27_s12 = smax.f32 %s248_s11, %s207_s0  ;;  %s209_s13 = spop %208 }
  0xb8   :  { %s36_s14 = smul.f32 %s209_s13, %s27_s12  ;;  %p26_p0 = scmp.gt.f32.partialorder %s207_s0, 0.0 }
  0xba   :  { %v37_v20 = vstv %s36_s14 }
  0xbb   :  { %234 = vlog2.f32 %v37_v20 }
  0xc1   :  { %v235_v21 = vpop.eup %234 }
  0xc2   :  { %v39_v22 = vmul.f32 0.6931472, %v235_v21 }
  0xc4   :  { %210 = vpush %v39_v22 }
  0xf2   :  { %v176_v25 = vpop.permute.xlu0 %175 }
  0xf5   :  { %s211_s15 = spop %210 }
  0xf6   :  { %s41_s16 = smul.f32 0.2, %s211_s15 }
  0xf8   :  { %v42_v27 = vstv %s41_s16 }
  0xf9   :  { %v43_v28 = vmul.f32 1.442695, %v42_v27 }
  0xfb   :  { %236 = vpow2.f32 %v43_v28 }
 0x101   :  { %v237_v31 = vpop.eup %236 }
 0x102   :  { %212 = vpush %v237_v31 }
 0x103   :  { %214 = vpush %v58_v32 }
 0x133   :  { %s213_s17 = spop %212 }
 0x134   :  { %s302_s17 = smov (!%p26_p0, %s213_s17), 0.0  ;;  %s215_s18 = spop %214 }
 0x135   :  { %s61_s19 = smax.f32 %s248_s11, %s215_s18  ;;  %p60_p1 = scmp.gt.f32.partialorder %s215_s18, 0.0 }
 0x136   :  { %s70_s20 = smul.f32 %s209_s13, %s61_s19 }
 0x138   :  { %v71_v33 = vstv %s70_s20 }
 0x139   :  { %238 = vlog2.f32 %v71_v33 }
 0x13f   :  { %v239_v34 = vpop.eup %238 }
 0x140   :  { %v73_v35 = vmul.f32 0.6931472, %v239_v34 }
 0x142   :  { %216 = vpush %v73_v35 }
 0x173   :  { %s217_s21 = spop %216 }
 0x174   :  { %s75_s22 = smul.f32 0.2, %s217_s21 }
 0x176   :  { %v76_v36 = vstv %s75_s22 }
 0x177   :  { %v77_v37 = vmul.f32 1.442695, %v76_v36 }
 0x179   :  { %240 = vpow2.f32 %v77_v37 }
 0x17f   :  { %v241_v38 = vpop.eup %240 }
 0x180   :  { %218 = vpush %v241_v38 }
 0x1b1   :  { %s219_s23 = spop %218 }
 0x1b2   :  { %s304_s23 = smov (!%p60_p1, %s219_s23), 0.0 }
 0x1b3   :  { %s81_s24 = sadd.f32 %s304_s23, %s302_s17 }
 0x1b5   :  { %v82_v39 = vstv %s81_s24 }
 0x1b6   :  { %242 = vrcp.f32 %v82_v39  ;;  %v94_v43 = vand.u32 2147483648, %v82_v39  ;;  %v92_v45 = vand.u32 2147483647, %v82_v39  ;;  %vm88_vm5 = vweird.f32 %v82_v39 }
 0x1b8   :  { %v95_v47 = vor.u32 1.1754944e-38, %v94_v43  ;;  %vm93_vm7 = vcmp.eq.f32.partialorder %v92_v45, 8.507059e+37 }
 0x1bc   :  { %v243_v40 = vpop.eup %242 }
 0x1bd   :  { %v84_v41 = vmul.f32 %v243_v40, %v82_v39  ;;  %vm89_vm4 = vweird.f32 %v243_v40 }
 0x1be   :  { %vm90_vm6 = vmor %vm88_vm5, %vm89_vm4 }
 0x1bf   :  { %v85_v42 = vsub.f32 1.0, %v84_v41 }
 0x1c1   :  { %v86_v44 = vmul.f32 %v243_v40, %v85_v42 }
 0x1c3   :  { %v87_v46 = vadd.f32 %v243_v40, %v86_v44 }
 0x1c5   :  { %v91_v48 = vsel %vm90_vm6, %v243_v40, %v87_v46 }
 0x1c6   :  { %v96_v49 = vsel %vm93_vm7, %v95_v47, %v91_v48 }
 0x1c7   :  { %220 = vpush %v96_v49 }
 0x1f8   :  { %s221_s25 = spop %220 }
 0x1f9   :  { %s98_s26 = smul.f32 %s221_s25, %s302_s17 }
 0x1fa   :  { %s118_s27 = smul.f32 %s221_s25, %s304_s23 }
 0x1fb   :  { %v99_v50 = vstv %s98_s26 }
 0x1fc   :  { %v119_v51 = vstv %s118_s27  ;;  %v100_v52 = vsel %vm12_vm1, %v99_v50, 0.0 }
 0x1fd   :  { %v120_v53 = vsel %vm47_vm2, %v119_v51, 0.0 }
 0x1fe   :  { %v121_v54 = vadd.f32 %v120_v53, %v100_v52 }
 0x200   :  { %v122_v55 = vsel %vm15_vm0, %v121_v54, 0.0 }
 0x201   :  { %123 = vadd.xlane.f32.xlu1 %v122_v55 }
 0x274   :  { %v124_v56 = vpop.xlane.xlu1 %123 }
 0x275   :  { %v125_v57 = vrot.slane %v124_v56, 4 }
 0x277   :  { %v126_v58 = vadd.f32 %v125_v57, %v124_v56 }
 0x279   :  { %v127_v59 = vrot.slane %v126_v58, 2 }
 0x27b   :  { %v128_v60 = vadd.f32 %v127_v59, %v126_v58 }
 0x27d   :  { %v129_v61 = vrot.slane %v128_v60, 1 }
 0x27f   :  { %v130_v62 = vadd.f32 %v129_v61, %v128_v60 }
 0x281   :  { %222 = vpush %v130_v62 }
 0x2b2   :  { %s223_s28 = spop %222 }
 0x2b3   :  { %v132_v63 = vstv %s223_s28 }
 0x2b4   :  { %244 = vrcp.f32 %v132_v63  ;;  %v144_v0 = vand.u32 2147483648, %v132_v63  ;;  %v142_v5 = vand.u32 2147483647, %v132_v63  ;;  %vm138_vm9 = vweird.f32 %v132_v63 }
 0x2b6   :  { %v145_v7 = vor.u32 1.1754944e-38, %v144_v0  ;;  %vm143_vm11 = vcmp.eq.f32.partialorder %v142_v5, 8.507059e+37 }
 0x2ba   :  { %v245_v1 = vpop.eup %244 }
 0x2bb   :  { %v134_v2 = vmul.f32 %v245_v1, %v132_v63  ;;  %vm139_vm8 = vweird.f32 %v245_v1 }
 0x2bc   :  { %vm140_vm10 = vmor %vm138_vm9, %vm139_vm8 }
 0x2bd   :  { %v135_v3 = vsub.f32 1.0, %v134_v2 }
 0x2bf   :  { %v136_v4 = vmul.f32 %v245_v1, %v135_v3 }
 0x2c1   :  { %v137_v6 = vadd.f32 %v245_v1, %v136_v4 }
 0x2c3   :  { %v141_v8 = vsel %vm140_vm10, %v245_v1, %v137_v6 }
 0x2c4   :  { %v146_v9 = vsel %vm143_vm11, %v145_v7, %v141_v8 }
 0x2c5   :  { %v147_v10 = vmul.f32 %v146_v9, %v121_v54 }
 0x2c7   :  { %v149_v11 = vperm.slane %v147_v10, 0 }
 0x2c9   :  { %150 = vrot.lane.b32.xlu1 %v149_v11, %s249_s29 }
 0x33b   :  { %v151_v14 = vpop.permute.xlu1 %150 }
 0x33c   :  { %v154_v15 = vsel %vm153_vm12, 0.0, %v151_v14 }
 0x33d   :  { %v155_v16 = vadd.f32 %v154_v15, %v147_v10 }
 0x33f   :  { %v157_v17 = vperm.slane %v155_v16, 0 }
 0x341   :  { %158 = vrot.lane.b32.xlu2 %v157_v17, %s251_s4 }
 0x39b   :  { %v159_v18 = vpop.permute.xlu2 %158 }
 0x39c   :  { %v162_v19 = vsel %vm161_vm13, 0.0, %v159_v18 }
 0x39d   :  { %v163_v20 = vadd.f32 %v162_v19, %v155_v16 }
 0x39f   :  { %v165_v21 = vperm.slane %v163_v20, 0 }
 0x3a1   :  { %166 = vrot.lane.b32.xlu2 %v165_v21, %s252_s5 }
 0x3fb   :  { %v167_v22 = vpop.permute.xlu2 %166 }
 0x3fc   :  { %v170_v23 = vsel %vm169_vm14, 0.0, %v167_v22 }
 0x3fd   :  { %v171_v24 = vadd.f32 %v170_v23, %v163_v20 }
 0x3ff   :  { %v179_v26 = vperm.slane %v171_v24, 0 }
 0x401   :  { %vm181_vm0 = vcmp.ge.f32.partialorder %v176_v25, %v179_v26 }
 0x402   :  { %v182_v27 = vsel %vm181_vm0, 1, %v250_v13 }
 0x403   :  { %v184_v28 = vsel %vm183_vm15, %v182_v27, 0 }
 0x404   :  { %v186_v29 = vshrl.u32 %v184_v28, 16  ;;  %v185_v30 = vand.u32 65535, %v184_v28 }
 0x406   :  { %v188_v31 = vcvt.s32.f32 %v186_v29  ;;  %v187_v32 = vcvt.s32.f32 %v185_v30 }
 0x408   :  { %191 = vadd.xlane.f32.xlu2 %v188_v31  ;;  %189 = vadd.xlane.f32.xlu1 %v187_v32 }
 0x47b   :  { %v192_v33 = vpop.xlane.xlu2 %191  ;;  %v190_v34 = vpop.xlane.xlu1 %189 }
 0x47c   :  { %v194_v35 = vcvt.f32.s32 %v192_v33  ;;  %v193_v37 = vcvt.f32.s32 %v190_v34 }
 0x47e   :  { %v195_v36 = vshll.u32 %v194_v35, 16 }
 0x480   :  { %v196_v38 = vadd.s32 %v195_v36, %v193_v37 }
 0x482   :  { %vm197_vm1 = vcmp.lt.s32.totalorder %v196_v38, 7 }
 0x483   :  { %v198_v39 = vsel %vm197_vm1, %v196_v38, 7 }
 0x484   :  { %199 = vst.msk [vmem:[%s300_s2] sm:$0xff] %vm153_vm12, %v198_v39 }

</bundles_post_ra>
